<compile_context>
chip_gen: v6e
topology: v6e:2x2x1
jax: 0.10.0
libtpu: 0.0.40
codegen_flags: <defaults>
</compile_context>

<pallas_src>
import functools

import jax
import jax.numpy as jnp
import numpy as np
from jax.experimental import pallas as pl
from jax.experimental.pallas import tpu as pltpu


# ---------------------------------------------------------------------------
# GELU (exact / erf formulation, matching torch.nn.GELU())
# ---------------------------------------------------------------------------
def _erf_f32(x):
    # Abramowitz & Stegun 7.1.26 rational approximation (max abs err ~1.5e-7), built from
    # ops guaranteed to lower in Mosaic.  Exact reciprocal (approx=False) per perf review:
    # the approximate EUP reciprocal degrades GELU accuracy; the divide still runs on EUP.
    a1, a2, a3, a4, a5 = 0.254829592, -0.284496736, 1.421413741, -1.453152027, 1.061405429
    p = 0.3275911
    sign = jnp.where(x < 0, -1.0, 1.0)
    ax = jnp.abs(x)
    t = pl.reciprocal(1.0 + p * ax, approx=False)
    poly = ((((a5 * t + a4) * t + a3) * t + a2) * t + a1) * t
    return sign * (1.0 - poly * jnp.exp(-ax * ax))


def _gelu_exact(x):
    return 0.5 * x * (1.0 + _erf_f32(x * 0.7071067811865476))


# ---------------------------------------------------------------------------
# Kernel: grid = (token_tiles, experts, hh_chunks); experts/chunks are reduction axes.
# ---------------------------------------------------------------------------
def moe_ffn_kernel(mask_ref, x_ref, gw_ref, w1_ref, b1_ref, w2_ref, b2_ref,
                   out_ref, acc_ref):
    i = pl.program_id(0)
    e = pl.program_id(1)
    c = pl.program_id(2)
    n_e = pl.num_programs(1)
    n_c = pl.num_programs(2)

    # Zero the f32 accumulator once per token tile.
    @pl.when((e == 0) & (c == 0))
    def _():
        acc_ref[...] = jnp.zeros_like(acc_ref)

    # Interim grouped-MoE: skip whole expert iterations whose routing-weight column is
    # all-zero for this token tile (saves MXU/VPU work; weight DMA still streams).
    @pl.when(mask_ref[i, e] != 0)
    def _():
        gw = gw_ref[...]                       # (TM, 1)  f32 routing weight column
        x = x_ref[...]                         # (TM, H)  bf16
        h = jnp.dot(x, w1_ref[...], preferred_element_type=jnp.float32) + b1_ref[...]
        h = _gelu_exact(h)                     # (TM, THH) f32
        h = h * gw                             # fold routing weight into the GELU output
        y = jnp.dot(h.astype(jnp.bfloat16), w2_ref[...],
                    preferred_element_type=jnp.float32)   # (TM, H) f32

        # Accumulate straight into the VMEM-resident accumulator; bias once per expert.
        @pl.when(c == 0)
        def _():
            acc_ref[...] += y + gw * b2_ref[...]

        @pl.when(c != 0)
        def _():
            acc_ref[...] += y

    # Epilogue: single cast + store per token tile (dropout == identity, eval mode).
    @pl.when((e == n_e - 1) & (c == n_c - 1))
    def _():
        out_ref[...] = acc_ref[...].astype(out_ref.dtype)


# ---------------------------------------------------------------------------
# Tiling heuristics
# ---------------------------------------------------------------------------
def _device_kind():
    try:
        return jax.devices()[0].device_kind.lower()
    except Exception:
        return ""


def _default_tm():
    kind = _device_kind()
    if "v5" in kind:
        return 256    # v5e MXU/HBM break-even ~240
    if "v6" in kind:
        return 1024   # v6e break-even ~700; 768-1024 fully hides weight-chunk DMA
    return 512        # v7x: ~310 break-even per TC (and keep >=2 tiles for the 2 TCs)


def _default_vmem_limit_bytes():
    cap = None
    try:
        cap = int(pltpu.get_tpu_info().vmem_capacity_bytes)
    except Exception:
        cap = None
    if not cap:
        kind = _device_kind()
        cap = 64 * 1024 * 1024 if "v7" in kind else 128 * 1024 * 1024
    # Leave ~12.5% headroom for compiler-internal scratch / spill.
    return cap - cap // 8


def _choose_tm(T, tm):
    tm = min(tm, T)
    if T % tm != 0:
        # Largest divisor of T (<= requested tm) that is a multiple of 8, else T itself.
        tm = next((d for d in range(tm, 0, -1)
                   if T % d == 0 and (d % 8 == 0 or d == T)), T)
    # On dual-TensorCore parts (v7x) a single token tile leaves one TC idle.
    if "v7" in _device_kind() and T // tm == 1 and T % 2 == 0 and (T // 2) % 8 == 0:
        tm = T // 2
    return tm


def _round_up(x, m):
    return ((x + m - 1) // m) * m


def _pick_hh_chunk(hh):
    # hh is already padded to a multiple of 128; never fall back to an unbounded full-Hh
    # block (that would reinstate the (TM, Hh) f32 intermediate the chunking exists to bound).
    for c in (512, 256, 128):
        if hh % c == 0:
            return c
    raise ValueError(f"4H hidden dim {hh} must be a multiple of 128 (pad in the wrapper)")


# ---------------------------------------------------------------------------
# pallas_call wrapper
# ---------------------------------------------------------------------------
def moe_experts_pallas(x2d, gw_et, w1, b1, w2, b2, *, tm=None, hh_chunk=None,
                       out_dtype=None, weight_buffers=None):
    """x2d (T,H) bf16, gw_et (E,T,1) f32, w1 (E,H,Hh) bf16, b1 (E,1,Hh) f32,
    w2 (E,Hh,H) bf16, b2 (E,1,H) f32  ->  (T,H) out_dtype."""
    T, H = x2d.shape
    E, _, Hh = w1.shape
    out_dtype = out_dtype if out_dtype is not None else jnp.bfloat16

    tm = _choose_tm(T, tm if tm is not None else _default_tm())
    n_tok_tiles = T // tm
    thh = hh_chunk if hh_chunk is not None else _pick_hh_chunk(Hh)
    assert Hh % thh == 0 and (thh % 128 == 0 or thh == Hh), (Hh, thh)
    n_chunks = Hh // thh

    # (n_tok_tiles, E) int32 "tile has any routed token" mask -> SMEM via scalar prefetch.
    mask = jnp.any(gw_et[:, :, 0].reshape(E, n_tok_tiles, tm) > 0,
                   axis=2).T.astype(jnp.int32)

    w_kwargs = {}
    if weight_buffers is not None:
        # e.g. weight_buffers=3 on v5e if profiling shows exposed weight-chunk DMA
        # (128 MiB VMEM easily affords the extra buffer).
        w_kwargs = dict(pipeline_mode=pl.Buffered(weight_buffers))

    return pl.pallas_call(
        moe_ffn_kernel,
        out_shape=jax.ShapeDtypeStruct((T, H), out_dtype),
        grid_spec=pltpu.PrefetchScalarGridSpec(
            num_scalar_prefetch=1,
            grid=(n_tok_tiles, E, n_chunks),
            in_specs=[
                pl.BlockSpec((tm, H), lambda i, e, c, m: (i, 0)),            # x tile (bf16)
                pl.BlockSpec((None, tm, 1), lambda i, e, c, m: (e, i, 0)),   # gw[e] column
                pl.BlockSpec((None, H, thh), lambda i, e, c, m: (e, 0, c),   # W1 chunk (bf16)
                             **w_kwargs),
                pl.BlockSpec((None, 1, thh), lambda i, e, c, m: (e, 0, c)),  # b1 chunk (f32)
                pl.BlockSpec((None, thh, H), lambda i, e, c, m: (e, c, 0),   # W2 chunk (bf16)
                             **w_kwargs),
                pl.BlockSpec((None, 1, H), lambda i, e, c, m: (e, 0, 0)),    # b2[e] (f32)
            ],
            out_specs=pl.BlockSpec((tm, H), lambda i, e, c, m: (i, 0)),
            scratch_shapes=[pltpu.VMEM((tm, H), jnp.float32)],               # f32 accumulator
        ),
        compiler_params=pltpu.CompilerParams(
            dimension_semantics=("parallel", "arbitrary", "arbitrary"),
            vmem_limit_bytes=_default_vmem_limit_bytes(),
        ),
    )(mask, x2d, gw_et, w1, b1, w2, b2)


def moe_forward(x, gate_w, w1, b1, w2, b2, num_experts_per_token, *,
                tm=None, hh_chunk=None):
    B, S, H = x.shape
    E = gate_w.shape[1]
    x2d = x.reshape(-1, H)

    # Routing (glue, torch semantics): gate linear + f32 softmax + top-k + renormalize.
    routes = x2d @ gate_w                                              # (T, E)
    probs = jax.nn.softmax(routes.astype(jnp.float32), axis=1).astype(x.dtype)
    vals, idx = jax.lax.top_k(probs, num_experts_per_token)            # (T, k)
    vals = vals / jnp.sum(vals, axis=-1, keepdims=True)
    vals = vals.astype(x.dtype)
    onehot = jax.nn.one_hot(idx, E, dtype=jnp.float32)                 # (T, k, E)
    gw_dense = jnp.einsum('tk,tke->te', vals.astype(jnp.float32), onehot)  # (T, E)
    gw_et = jnp.transpose(gw_dense, (1, 0))[:, :, None]                # (E, T, 1) f32

    # Pad the 4H hidden dim to a multiple of 128 (zero pad is an exact no-op: GELU(0)=0
    # and the padded W2 rows are multiplied by those zeros), so the chunked weight grid
    # axis never needs a full-Hh fallback.
    Hh = w1.shape[-1]
    Hh_pad = max(128, _round_up(Hh, 128))
    if Hh_pad != Hh:
        pad = Hh_pad - Hh
        w1 = jnp.pad(w1, ((0, 0), (0, 0), (0, pad)))
        b1 = jnp.pad(b1, ((0, 0), (0, 0), (0, pad)))
        w2 = jnp.pad(w2, ((0, 0), (0, pad), (0, 0)))

    # bf16 matmul operands, f32 accumulation; output stored in the module's input dtype
    # (bf16 models therefore get lane-dense bf16 stores; H multiples of 128 recommended).
    out2d = moe_experts_pallas(
        x2d.astype(jnp.bfloat16), gw_et,
        w1.astype(jnp.bfloat16), b1.astype(jnp.float32),
        w2.astype(jnp.bfloat16), b2.astype(jnp.float32),
        tm=tm, hh_chunk=hh_chunk, out_dtype=x.dtype)
    return out2d.reshape(B, S, H)


# ---------------------------------------------------------------------------
# Pure-JAX reference (dense-equivalent of the torch scatter/index_add formulation)
# ---------------------------------------------------------------------------
def moe_reference(x, gate_w, w1, b1, w2, b2, k):
    B, S, H = x.shape
    E = gate_w.shape[1]
    x2d = x.reshape(-1, H)
    routes = x2d @ gate_w
    probs = jax.nn.softmax(routes.astype(jnp.float32), axis=1).astype(x.dtype)
    vals, idx = jax.lax.top_k(probs, k)
    vals = vals / jnp.sum(vals, axis=-1, keepdims=True)
    onehot = jax.nn.one_hot(idx, E, dtype=x.dtype)
    gw = jnp.einsum('tk,tke->te', vals, onehot)
    xb = x2d.astype(jnp.bfloat16)
    out = jnp.zeros((B * S, H), jnp.float32)
    for e in range(E):
        h = jnp.dot(xb, w1[e].astype(jnp.bfloat16),
                    preferred_element_type=jnp.float32) + b1[e]
        h = jax.nn.gelu(h, approximate=False)
        y = jnp.dot(h.astype(jnp.bfloat16), w2[e].astype(jnp.bfloat16),
                    preferred_element_type=jnp.float32) + b2[e]
        out = out + gw[:, e:e + 1] * y
    return out.reshape(B, S, H)


if __name__ == "__main__":
    key = jax.random.PRNGKey(0)

    def make_inputs(k, B, S, H, E):
        Hh = 4 * H
        kx, kg, k1, kb1, k2, kb2 = jax.random.split(k, 6)
        x = jax.random.normal(kx, (B, S, H), dtype=jnp.float32)
        gate_w = jax.random.normal(kg, (H, E), dtype=jnp.float32) * (1.0 / np.sqrt(H))
        w1 = jax.random.normal(k1, (E, H, Hh), dtype=jnp.float32) * (1.0 / np.sqrt(H))
        b1 = jax.random.normal(kb1, (E, 1, Hh), dtype=jnp.float32) * 0.02
        w2 = jax.random.normal(k2, (E, Hh, H), dtype=jnp.float32) * (1.0 / np.sqrt(Hh))
        b2 = jax.random.normal(kb2, (E, 1, H), dtype=jnp.float32) * 0.02
        return x, gate_w, w1, b1, w2, b2

    kA, kB = jax.random.split(key)

    # Config A: n_embd=32 (4H=128 -> single weight chunk), 2 token tiles x 4 experts, top-2.
    B, S, H, E, K = 2, 8, 32, 4, 2
    x, gate_w, w1, b1, w2, b2 = make_inputs(kA, B, S, H, E)
    out = jax.block_until_ready(moe_forward(x, gate_w, w1, b1, w2, b2, K, tm=8))
    ref = moe_reference(x, gate_w, w1, b1, w2, b2, K)
    assert out.shape == (B, S, H)
    np.testing.assert_allclose(np.asarray(out), np.asarray(ref), rtol=5e-3, atol=5e-3)

    # Config B: n_embd=64 with hh_chunk=128 -> exercises the streamed 4H-chunk grid axis
    # (grid = 2 token tiles x 4 experts x 2 weight chunks) plus the expert-skip mask.
    B, S, H, E, K = 2, 8, 64, 4, 2
    x, gate_w, w1, b1, w2, b2 = make_inputs(kB, B, S, H, E)
    out = jax.block_until_ready(
        moe_forward(x, gate_w, w1, b1, w2, b2, K, tm=8, hh_chunk=128))
    ref = moe_reference(x, gate_w, w1, b1, w2, b2, K)
    np.testing.assert_allclose(np.asarray(out), np.asarray(ref), rtol=5e-3, atol=5e-3)

    print("KERNEL_OK")
</pallas_src>

<mosaic_0001>
module attributes {stable_mosaic.version = 11 : i64} {
  func.func @moe_ffn_kernel(%arg0: i32, %arg1: i32, %arg2: i32, %arg3: memref<2x4xi32, #tpu.memory_space<smem>>, %arg4: memref<8x32xbf16, #tpu.memory_space<vmem>>, %arg5: memref<1x8x1xf32, #tpu.memory_space<vmem>>, %arg6: memref<1x32x128xbf16, #tpu.memory_space<vmem>>, %arg7: memref<1x1x128xf32, #tpu.memory_space<vmem>>, %arg8: memref<1x128x32xbf16, #tpu.memory_space<vmem>>, %arg9: memref<1x1x32xf32, #tpu.memory_space<vmem>>, %arg10: memref<8x32xf32, #tpu.memory_space<vmem>>, %arg11: memref<8x32xf32, #tpu.memory_space<vmem>>) attributes {dimension_semantics = [#tpu.dimension_semantics<parallel>, #tpu.dimension_semantics<arbitrary>, #tpu.dimension_semantics<arbitrary>], iteration_bounds = array<i64: 2, 4, 1>, scalar_prefetch = 1 : i64, scratch_operands = 1 : i64, tpu.core_type = #tpu.core_type<tc>, window_params = [{transform_indices = @transform_0, window_bounds = array<i64: 8, 32>}, {transform_indices = @transform_1, window_bounds = array<i64: 1, 8, 1>}, {transform_indices = @transform_2, window_bounds = array<i64: 1, 32, 128>}, {transform_indices = @transform_3, window_bounds = array<i64: 1, 1, 128>}, {transform_indices = @transform_4, window_bounds = array<i64: 1, 128, 32>}, {transform_indices = @transform_5, window_bounds = array<i64: 1, 1, 32>}, {transform_indices = @transform_6, window_bounds = array<i64: 8, 32>}]} {
    %c0_i32 = arith.constant 0 : i32
    %0 = arith.cmpi eq, %arg1, %c0_i32 : i32
    %c0_i32_0 = arith.constant 0 : i32
    %1 = arith.cmpi eq, %arg2, %c0_i32_0 : i32
    %2 = arith.andi %0, %1 : i1
    %3 = arith.extui %2 : i1 to i32
    %c0_i32_1 = arith.constant 0 : i32
    %4 = arith.cmpi ne, %3, %c0_i32_1 : i32
    scf.if %4 {
      %cst = arith.constant 0.000000e+00 : f32
      %16 = vector.broadcast %cst : f32 to vector<8x32xf32>
      %c0 = arith.constant 0 : index
      %c0_6 = arith.constant 0 : index
      %17 = vector.load %arg11[%c0, %c0_6] : memref<8x32xf32, #tpu.memory_space<vmem>>, vector<8x32xf32>
      tpu.vector_store %arg11[%c0, %c0_6], %16 {strides = array<i32>} : memref<8x32xf32, #tpu.memory_space<vmem>>, vector<8x32xf32>,
    } else {
    }
    %5 = arith.index_cast %arg0 : i32 to index
    %6 = arith.index_cast %arg1 : i32 to index
    %7 = memref.load %arg3[%5, %6] : memref<2x4xi32, #tpu.memory_space<smem>>
    %c0_i32_2 = arith.constant 0 : i32
    %8 = arith.cmpi ne, %7, %c0_i32_2 : i32
    %9 = arith.extui %8 : i1 to i32
    %c0_i32_3 = arith.constant 0 : i32
    %10 = arith.cmpi ne, %9, %c0_i32_3 : i32
    scf.if %10 {
      %c0 = arith.constant 0 : index
      %c0_6 = arith.constant 0 : index
      %c0_7 = arith.constant 0 : index
      %16 = vector.load %arg5[%c0, %c0_6, %c0_7] : memref<1x8x1xf32, #tpu.memory_space<vmem>>, vector<1x8x1xf32>
      %17 = vector.shape_cast %16 : vector<1x8x1xf32> to vector<8x1xf32>
      %c0_8 = arith.constant 0 : index
      %c0_9 = arith.constant 0 : index
      %18 = vector.load %arg4[%c0_8, %c0_9] : memref<8x32xbf16, #tpu.memory_space<vmem>>, vector<8x32xbf16>
      %c0_10 = arith.constant 0 : index
      %c0_11 = arith.constant 0 : index
      %c0_12 = arith.constant 0 : index
      %19 = vector.load %arg6[%c0_10, %c0_11, %c0_12] : memref<1x32x128xbf16, #tpu.memory_space<vmem>>, vector<1x32x128xbf16>
      %20 = vector.shape_cast %19 : vector<1x32x128xbf16> to vector<32x128xbf16>
      %cst = arith.constant dense<0.000000e+00> : vector<8x128xf32>
      %21 = tpu.matmul %18, %20, %cst {dimension_numbers = #tpu.dot_dimension_numbers<[1], [0], [0], [1], [0, 0, 1, 1], [], []>} : vector<8x32xbf16>, vector<32x128xbf16>, vector<8x128xf32> -> vector<8x128xf32>
      %c0_13 = arith.constant 0 : index
      %c0_14 = arith.constant 0 : index
      %c0_15 = arith.constant 0 : index
      %22 = vector.load %arg7[%c0_13, %c0_14, %c0_15] : memref<1x1x128xf32, #tpu.memory_space<vmem>>, vector<1x1x128xf32>
      %23 = vector.shape_cast %22 : vector<1x1x128xf32> to vector<1x128xf32>
      %24 = vector.broadcast %23 : vector<1x128xf32> to vector<8x128xf32>
      %25 = arith.addf %21, %24 : vector<8x128xf32>
      %cst_16 = arith.constant 5.000000e-01 : f32
      %26 = vector.broadcast %cst_16 : f32 to vector<8x128xf32>
      %27 = arith.mulf %26, %25 : vector<8x128xf32>
      %cst_17 = arith.constant 0.707106769 : f32
      %28 = vector.broadcast %cst_17 : f32 to vector<8x128xf32>
      %29 = arith.mulf %25, %28 : vector<8x128xf32>
      %cst_18 = arith.constant 0.000000e+00 : f32
      %30 = vector.broadcast %cst_18 : f32 to vector<8x128xf32>
      %31 = arith.cmpf olt, %29, %30 : vector<8x128xf32>
      %cst_19 = arith.constant -1.000000e+00 : f32
      %cst_20 = arith.constant 1.000000e+00 : f32
      %32 = vector.broadcast %cst_19 : f32 to vector<8x128xf32>
      %33 = vector.broadcast %cst_20 : f32 to vector<8x128xf32>
      %34 = arith.select %31, %32, %33 : vector<8x128xi1>, vector<8x128xf32>
      %35 = math.absf %29 : vector<8x128xf32>
      %cst_21 = arith.constant 0.327591091 : f32
      %36 = vector.broadcast %cst_21 : f32 to vector<8x128xf32>
      %37 = arith.mulf %36, %35 : vector<8x128xf32>
      %cst_22 = arith.constant 1.000000e+00 : f32
      %38 = vector.broadcast %cst_22 : f32 to vector<8x128xf32>
      %39 = arith.addf %38, %37 : vector<8x128xf32>
      %40 = tpu.reciprocal %39 : vector<8x128xf32> -> vector<8x128xf32>
      %cst_23 = arith.constant 1.06140542 : f32
      %41 = vector.broadcast %cst_23 : f32 to vector<8x128xf32>
      %42 = arith.mulf %41, %40 : vector<8x128xf32>
      %cst_24 = arith.constant -1.45315206 : f32
      %43 = vector.broadcast %cst_24 : f32 to vector<8x128xf32>
      %44 = arith.addf %42, %43 : vector<8x128xf32>
      %45 = arith.mulf %44, %40 : vector<8x128xf32>
      %cst_25 = arith.constant 1.42141378 : f32
      %46 = vector.broadcast %cst_25 : f32 to vector<8x128xf32>
      %47 = arith.addf %45, %46 : vector<8x128xf32>
      %48 = arith.mulf %47, %40 : vector<8x128xf32>
      %cst_26 = arith.constant -0.284496725 : f32
      %49 = vector.broadcast %cst_26 : f32 to vector<8x128xf32>
      %50 = arith.addf %48, %49 : vector<8x128xf32>
      %51 = arith.mulf %50, %40 : vector<8x128xf32>
      %cst_27 = arith.constant 0.254829586 : f32
      %52 = vector.broadcast %cst_27 : f32 to vector<8x128xf32>
      %53 = arith.addf %51, %52 : vector<8x128xf32>
      %54 = arith.mulf %53, %40 : vector<8x128xf32>
      %cst_28 = arith.constant 0.000000e+00 : f32
      %55 = vector.broadcast %cst_28 : f32 to vector<8x128xf32>
      %56 = arith.subf %55, %35 : vector<8x128xf32>
      %57 = arith.mulf %56, %35 : vector<8x128xf32>
      %58 = math.exp %57 : vector<8x128xf32>
      %59 = arith.mulf %54, %58 : vector<8x128xf32>
      %cst_29 = arith.constant 1.000000e+00 : f32
      %60 = vector.broadcast %cst_29 : f32 to vector<8x128xf32>
      %61 = arith.subf %60, %59 : vector<8x128xf32>
      %62 = arith.mulf %34, %61 : vector<8x128xf32>
      %cst_30 = arith.constant 1.000000e+00 : f32
      %63 = vector.broadcast %cst_30 : f32 to vector<8x128xf32>
      %64 = arith.addf %63, %62 : vector<8x128xf32>
      %65 = arith.mulf %27, %64 : vector<8x128xf32>
      %66 = vector.broadcast %17 : vector<8x1xf32> to vector<8x128xf32>
      %67 = arith.mulf %65, %66 : vector<8x128xf32>
      %68 = arith.truncf %67 : vector<8x128xf32> to vector<8x128xbf16>
      %c0_31 = arith.constant 0 : index
      %c0_32 = arith.constant 0 : index
      %c0_33 = arith.constant 0 : index
      %69 = vector.load %arg8[%c0_31, %c0_32, %c0_33] : memref<1x128x32xbf16, #tpu.memory_space<vmem>>, vector<1x128x32xbf16>
      %70 = vector.shape_cast %69 : vector<1x128x32xbf16> to vector<128x32xbf16>
      %cst_34 = arith.constant dense<0.000000e+00> : vector<8x32xf32>
      %71 = tpu.matmul %68, %70, %cst_34 {dimension_numbers = #tpu.dot_dimension_numbers<[1], [0], [0], [1], [0, 0, 1, 1], [], []>} : vector<8x128xbf16>, vector<128x32xbf16>, vector<8x32xf32> -> vector<8x32xf32>
      %c0_i32_35 = arith.constant 0 : i32
      %72 = arith.cmpi eq, %arg2, %c0_i32_35 : i32
      %73 = arith.extui %72 : i1 to i32
      %c0_i32_36 = arith.constant 0 : i32
      %74 = arith.cmpi ne, %73, %c0_i32_36 : i32
      scf.if %74 {
        %c0_39 = arith.constant 0 : index
        %c0_40 = arith.constant 0 : index
        %78 = vector.load %arg11[%c0_39, %c0_40] : memref<8x32xf32, #tpu.memory_space<vmem>>, vector<8x32xf32>
        %c0_41 = arith.constant 0 : index
        %c0_42 = arith.constant 0 : index
        %c0_43 = arith.constant 0 : index
        %79 = vector.load %arg9[%c0_41, %c0_42, %c0_43] : memref<1x1x32xf32, #tpu.memory_space<vmem>>, vector<1x1x32xf32>
        %80 = vector.shape_cast %79 : vector<1x1x32xf32> to vector<1x32xf32>
        %81 = vector.broadcast %17 : vector<8x1xf32> to vector<8x32xf32>
        %82 = vector.broadcast %80 : vector<1x32xf32> to vector<8x32xf32>
        %83 = arith.mulf %81, %82 : vector<8x32xf32>
        %84 = arith.addf %71, %83 : vector<8x32xf32>
        %85 = arith.addf %78, %84 : vector<8x32xf32>
        %c0_44 = arith.constant 0 : index
        %c0_45 = arith.constant 0 : index
        %86 = vector.load %arg11[%c0_44, %c0_45] : memref<8x32xf32, #tpu.memory_space<vmem>>, vector<8x32xf32>
        tpu.vector_store %arg11[%c0_44, %c0_45], %85 {strides = array<i32>} : memref<8x32xf32, #tpu.memory_space<vmem>>, vector<8x32xf32>,
      } else {
      }
      %c0_i32_37 = arith.constant 0 : i32
      %75 = arith.cmpi ne, %arg2, %c0_i32_37 : i32
      %76 = arith.extui %75 : i1 to i32
      %c0_i32_38 = arith.constant 0 : i32
      %77 = arith.cmpi ne, %76, %c0_i32_38 : i32
      scf.if %77 {
        %c0_39 = arith.constant 0 : index
        %c0_40 = arith.constant 0 : index
        %78 = vector.load %arg11[%c0_39, %c0_40] : memref<8x32xf32, #tpu.memory_space<vmem>>, vector<8x32xf32>
        %79 = arith.addf %78, %71 : vector<8x32xf32>
        %c0_41 = arith.constant 0 : index
        %c0_42 = arith.constant 0 : index
        %80 = vector.load %arg11[%c0_41, %c0_42] : memref<8x32xf32, #tpu.memory_space<vmem>>, vector<8x32xf32>
        tpu.vector_store %arg11[%c0_41, %c0_42], %79 {strides = array<i32>} : memref<8x32xf32, #tpu.memory_space<vmem>>, vector<8x32xf32>,
      } else {
      }
    } else {
    }
    %c3_i32 = arith.constant 3 : i32
    %11 = arith.cmpi eq, %arg1, %c3_i32 : i32
    %c0_i32_4 = arith.constant 0 : i32
    %12 = arith.cmpi eq, %arg2, %c0_i32_4 : i32
    %13 = arith.andi %11, %12 : i1
    %14 = arith.extui %13 : i1 to i32
    %c0_i32_5 = arith.constant 0 : i32
    %15 = arith.cmpi ne, %14, %c0_i32_5 : i32
    scf.if %15 {
      %c0 = arith.constant 0 : index
      %c0_6 = arith.constant 0 : index
      %16 = vector.load %arg11[%c0, %c0_6] : memref<8x32xf32, #tpu.memory_space<vmem>>, vector<8x32xf32>
      %c0_7 = arith.constant 0 : index
      %c0_8 = arith.constant 0 : index
      %17 = vector.load %arg10[%c0_7, %c0_8] : memref<8x32xf32, #tpu.memory_space<vmem>>, vector<8x32xf32>
      tpu.vector_store %arg10[%c0_7, %c0_8], %16 {strides = array<i32>} : memref<8x32xf32, #tpu.memory_space<vmem>>, vector<8x32xf32>,
    } else {
    }
    return
  }
  func.func @transform_0(%arg0: i32, %arg1: i32, %arg2: i32, %arg3: memref<2x4xi32, #tpu.memory_space<smem>>) -> (i32, i32) {
    %c0_i32 = arith.constant 0 : i32
    %c0_i32_0 = arith.constant 0 : i32
    return %arg0, %c0_i32 : i32, i32
  }
  func.func @transform_1(%arg0: i32, %arg1: i32, %arg2: i32, %arg3: memref<2x4xi32, #tpu.memory_space<smem>>) -> (i32, i32, i32) {
    %c0_i32 = arith.constant 0 : i32
    %c0_i32_0 = arith.constant 0 : i32
    return %arg1, %arg0, %c0_i32 : i32, i32, i32
  }
  func.func @transform_2(%arg0: i32, %arg1: i32, %arg2: i32, %arg3: memref<2x4xi32, #tpu.memory_space<smem>>) -> (i32, i32, i32) {
    %c0_i32 = arith.constant 0 : i32
    %c0_i32_0 = arith.constant 0 : i32
    return %arg1, %c0_i32, %arg2 : i32, i32, i32
  }
  func.func @transform_3(%arg0: i32, %arg1: i32, %arg2: i32, %arg3: memref<2x4xi32, #tpu.memory_space<smem>>) -> (i32, i32, i32) {
    %c0_i32 = arith.constant 0 : i32
    %c0_i32_0 = arith.constant 0 : i32
    return %arg1, %c0_i32, %arg2 : i32, i32, i32
  }
  func.func @transform_4(%arg0: i32, %arg1: i32, %arg2: i32, %arg3: memref<2x4xi32, #tpu.memory_space<smem>>) -> (i32, i32, i32) {
    %c0_i32 = arith.constant 0 : i32
    %c0_i32_0 = arith.constant 0 : i32
    return %arg1, %arg2, %c0_i32 : i32, i32, i32
  }
  func.func @transform_5(%arg0: i32, %arg1: i32, %arg2: i32, %arg3: memref<2x4xi32, #tpu.memory_space<smem>>) -> (i32, i32, i32) {
    %c0_i32 = arith.constant 0 : i32
    %c0_i32_0 = arith.constant 0 : i32
    %c0_i32_1 = arith.constant 0 : i32
    return %arg1, %c0_i32, %c0_i32_0 : i32, i32, i32
  }
  func.func @transform_6(%arg0: i32, %arg1: i32, %arg2: i32, %arg3: memref<2x4xi32, #tpu.memory_space<smem>>) -> (i32, i32) {
    %c0_i32 = arith.constant 0 : i32
    %c0_i32_0 = arith.constant 0 : i32
    return %arg0, %c0_i32 : i32, i32
  }
}

</mosaic_0001>

<bundles_post_ra>
// kernel: tpu_custom_call.1
= control target key start
LH: loop header
LB: loop body
LE: loop exit
PB: predicated region body
PF: predicated region fallthrough
CT: control target
= control target key end

     0   :  { %s1343_s0 = inlined_call_operand.vmem [shape: s32[2,4], index: 0, kind: input, shape index: {}]   ;;  %s1344_s1 = inlined_call_operand.vmem [shape: bf16[16,32], index: 1, kind: input, shape index: {}]   ;;  %s1345_s2 = inlined_call_operand.vmem [shape: f32[4,16,1], index: 2, kind: input, shape index: {}]   ;;  %s1346_s3 = inlined_call_operand.vmem [shape: bf16[4,32,128], index: 3, kind: input, shape index: {}]   ;;  %s1347_s4 = inlined_call_operand.vmem [shape: f32[4,1,128], index: 4, kind: input, shape index: {}]   ;;  %s1348_s5 = inlined_call_operand.vmem [shape: bf16[4,128,32], index: 5, kind: input, shape index: {}]   ;;  %s1349_s6 = inlined_call_operand.vmem [shape: f32[4,1,32], index: 6, kind: input, shape index: {}]   ;;  %s1350_s7 = inlined_call_operand.hbm [shape: f32[16,32], index: 7, kind: output, shape index: {}]  }
   0x1   :  { %1361 = sst [smem:[#allocation18_spill]] %s1350_s7  ;;  %s12_s26 = sshll.u32 %s1343_s0, 4  ;;  %s13_s26 = int_to_ptr.vmem [resolvable:$true] %s12_s26 }
   0x2   :  { %s999_s27 = scalar_lea.vmem %s13_s26, 32  ;;  %p1004_p1 = scmp.lt.s32.totalorder %s13_s26, %s13_s26 }
   0x3   :  { %p1000_p0 = scmp.ne.s32.totalorder %s13_s26, %s999_s27  ;;  %p1005_p2 = scmp.lt.s32.totalorder %s999_s27, %s999_s27 }
   0x5   :  { %p1006_p3 = por %p1005_p2, %p1004_p1 }
   0x7   :  { %p1007_p4 = pnand %p1006_p3, %p1000_p0 }
   0x9   :  { %1010 = shalt.err (!%p1007_p4)  }
   0xa   :  { %s1107_s28 = smov [#allocation4]  }
   0xb   :  { %15 = dma.vmem_to_smem %s13_s26, 32, %s1107_s28, [#allocation3] }
   0xc   :  { %1069 = dma.done.wait [#allocation3], 32 }
   0xd   :  { %1070 = vsyncadd [#allocation3], 4294967264 }
   0xe   :  { %17 = sfence }
   0xf   :  { %18 = vsyncpa [#allocation6], 0 }
  0x10   :  { %20 = vsyncpa [#allocation6 + $0x1], 0  ;;  %s1157_s29 = smov 0   ;;  %s1159_s30 = smov 0  }
  0x11   :  { %s1161_s0 = smov 0   ;;  %s1163_s8 = smov 0  }
  0x12   :  { %s1165_s9 = smov 0   ;;  %s1167_s10 = smov 0  }
  0x13   :  { %s1169_s11 = smov 0   ;;  %s1171_s12 = smov 0  }
  0x14 LB: > { %1362 = sst [smem:[#allocation9_spill]] %s1077_s29  ;;  %s829_s13 = sadd.s32 4294967295, %s1105_s12   ;;  %s1105_s12 = sphi %s1171_s12, %s26_s12   ;;  %s1101_s11 = sphi %s1169_s11, %s1383_s11   ;;  %s1097_s10 = sphi %s1167_s10, %s1382_s10   ;;  %s1093_s9 = sphi %s1165_s9, %s1381_s9   ;;  %s1089_s8 = sphi %s1163_s8, %s1380_s8   ;;  %s1085_s0 = sphi %s1161_s0, %s1379_s0   ;;  %s1081_s30 = sphi %s1159_s30, %s1385_s30   ;;  %s1077_s29 = sphi %s1157_s29, %s1384_s29  }
  0x15   : > { %1363 = sst [smem:[#allocation10_spill]] %s1085_s0  ;;  %s830_s14 = sadd.s32 4294967294, %s1105_s12  }
  0x16   : > { %1364 = sst [smem:[#allocation11_spill]] %s1097_s10  ;;  %s41_s15 = sadd.s32 1, %s1097_s10 }
  0x17   : > { %1365 = sst [smem:[#allocation12_spill]] %s1101_s11  ;;  %p43_p5 = scmp.ge.s32.totalorder %s41_s15, 4 }
  0x18   : > { %1366 = sst [smem:[#allocation13_spill]] %s1105_s12  ;;  %s45_s16 = sadd.s32 1, %s1101_s11 }
  0x19   : > { %p226_p6 = scmp.ne.s32.totalorder %s1085_s0, %s1081_s30  ;;  %p227_p7 = scmp.eq.s32.totalorder %s829_s13, 7 }
  0x1a   : > { %s1387_s15 = smov (%p43_p5, %s41_s15), 0  ;;  %s1389_s16 = smov (!%p43_p5, %s45_s16), %s1101_s11 }
  0x1b   : > { %1367 = sst [smem:[#allocation14_spill]] %s1387_s15  ;;  %p1206_p8 = por %p227_p7, %p226_p6 }
  0x1c   : > { %p232_p9 = scmp.ne.s32.totalorder %s1081_s30, %s1077_s29  ;;  %p47_p10 = scmp.ge.s32.totalorder %s1389_s16, 2 }
  0x1d   : > { %p233_p11 = scmp.eq.s32.totalorder %s830_s14, 7  ;;  %p833_p12 = scmp.ge.s32.totalorder %s1105_s12, 1 }
  0x1e   : > { %p308_p13 = scmp.lt.s32.totalorder %s1105_s12, 9  ;;  %s1391_s16 = smov (%p47_p10, %s1389_s16), 0 }
  0x1f   : > { %1369 = sst [smem:[#allocation15_spill]] %s1391_s16  ;;  %p1216_p0 = por %p233_p11, %p232_p9 }
  0x20   : > { %p309_p1 = pnand %p833_p12, %p308_p13  ;;  %s213_s19 = ssub.s32 %s1101_s11, %s1391_s16 }
  0x21   : > { %s1370_s18 = scalar_select %p1216_p0, 1, 0 }
  0x22   : > { %s216_s20 = sadd.s32 1, %s1085_s0  ;;  %p214_p2 = scmp.eq.s32.totalorder %s213_s19, 0 }
  0x23   : > { %1371 = sst [smem:[#allocation16_spill]] %s1370_s18  ;;  %312 = sbr.rel (%p309_p1) target bundleno = 559 (0x22f), region = 44 }
  0x24   : > { %s1224_s21 = scalar_select %p214_p2, %s1085_s0, %s216_s20  }
  0x25   : > { %s1351_s22 = sand.u32 (!%p309_p1), 1, %s1081_s30   ;;  %p371_p3 = scmp.lt.s32.totalorder (!%p309_p1), %s1093_s9, 1 }
  0x26   : > { %1372 = sst [smem:[#allocation17_spill]] %s1224_s21  ;;  %s1230_s23 = sshll.u32 (!%p309_p1), %s1351_s22, 3 }
  0x27   : > { %p375_p4 = scmp.lt.s32.totalorder (!%p309_p1), %s1089_s8, 3  ;;  %p411_p5 = scmp.eq.s32.totalorder (!%p309_p1), %s1089_s8, 0 }
  0x28   : > { %s372_s24 = scalar_select %p371_p3, %s1093_s9, 1  ;;  %vm417_vm0 = vcmask (%p411_p5), 261120   ;;  %v1108_v0 = vmov (%p411_p5), 0.0  }
  0x29   : > { %s1236_s25 = scalar_select %p375_p4, %s1089_s8, 3  ;;  %418 = vst.msk [vmem:[#allocation2] sm:$0xff] (%p411_p5), %vm417_vm0, %v1108_v0 }
  0x2a   : > { %s835_s26 = sshll.u32 %s372_s24, 2  ;;  %s370_s15 = scalar_lea.vmem [#allocation5], %s1230_s23 }
  0x2b   : > { %s1241_s13 = scalar_lea.vmem %s1344_s1, %s835_s26  ;;  %s836_s14 = sshll.u32 %s1236_s25, 1 }
  0x2c   : > { %s380_s19 = sadd.s32 %s836_s14, %s372_s24  ;;  %s863_s20 = sshll.u32 %s1236_s25, 4 }
  0x2d   : > { %s837_s22 = sshll.u32 %s380_s19, 3  ;;  %s390_s11 = scalar_lea.vmem %s1346_s3, %s863_s20 }
  0x2e   : > { %s382_s0 = scalar_lea.vmem %s1345_s2, %s837_s22  ;;  %s396_s12 = scalar_lea.vmem %s1347_s4, %s1236_s25 }
  0x2f   : > { %s864_s7 = sshll.u32 %s1236_s25, 6  ;;  %s409_s28 = scalar_lea.vmem %s1349_s6, %s1236_s25 }
  0x30   : > { %s1263_s19 = scalar_lea.vmem %s1348_s5, %s864_s7  ;;  %416 = sbr.rel (!%p411_p5) target bundleno = 53 (0x35), region = 48 }
  0x35 PF: > { %s419_s29 = sshra.s32 %s1089_s8, 7  ;;  %s424_s10 = sand.u32 127, %s1089_s8 }
  0x36   : > { %s421_s16 = sadd.s32 %s1093_s9, %s419_s29 }
  0x37   : > { %s843_s18 = sshll.u32 %s421_s16, 7 }
  0x38   : > { %s425_s21 = sadd.s32 %s843_s18, %s424_s10 }
  0x39   : > { %s426_s22 = sld [smem:[#allocation4 + %s425_s21]] }
  0x3f   : > { %p844_p6 = scmp.eq.s32.totalorder %s426_s22, 0 }
  0x41   : > { %430 = sbr.rel (%p844_p6) target bundleno = 527 (0x20f), region = 52 }
  0x46   : > { %v985_v1 = vld [vmem:[%s390_s11 + $0x8] sm:$0xff]   ;;  %v1109_v2 = vmov 0.0   ;;  %v986_v3 = vld [vmem:[%s390_s11] sm:$0xff]   ;;  %vm1110_vm1 = vmmov 0   ;;  %vm456_vm2 = vcmask 261120   ;;  %v1111_v5 = vmov 0  }
  0x47   : > { %879 = vmatprep.subr.bf16.mxu0 %v1109_v2  ;;  %887 = vmatprep.subr.bf16.mxu1 %v1109_v2  ;;  %v431_v4 = vld [vmem:[%s382_s0] sm:$0xff]  ;;  %v987_v7 = vld [vmem:[%s1263_s19 + $0x38] sm:$0xff]   ;;  %v988_v8 = vld [vmem:[%s1263_s19 + $0x30] sm:$0xff]   ;;  %v1112_v41 = vmov 1.0  }
  0x48   : > { %880 = vmatpush3.bf16.msra.mxu0 %v985_v1  ;;  %883 = vmatprep.mubr.msk.bf16.mxu0 %vm1110_vm1, %v1109_v2  ;;  %v432_v6 = vld [vmem:[%s1241_s13] sm:$0xf]  ;;  %v989_v9 = vld [vmem:[%s1263_s19 + $0x28] sm:$0xff]   ;;  %v991_v11 = vld [vmem:[%s1263_s19 + $0x18] sm:$0xff]  }
  0x49   : > { %881 = vmatprep.subr.bf16.mxu0 %v1109_v2  ;;  %984 = vset.pattern.permute.xlu0 %v1111_v5  ;;  %v990_v10 = vld [vmem:[%s1263_s19 + $0x20] sm:$0xff]   ;;  %v992_v12 = vld [vmem:[%s1263_s19 + $0x10] sm:$0xff]   ;;  %v993_v13 = vld [vmem:[%s1263_s19 + $0x8] sm:$0xff]  }
  0x4a   : > { %528 = vperm.xlu0 %984, %v431_v4   ;;  %903 = vmatprep.mubr.msk.bf16.mxu1 %vm1110_vm1, %v1109_v2  ;;  %v994_v14 = vld [vmem:[%s1263_s19] sm:$0xff]  }
  0x4b   : > { %888 = vmatpush3.bf16.msra.mxu1 %v987_v7  ;;  %v845_v15 = vld [vmem:[%s396_s12] ss:$0 sm:$0xff] }
  0x4c   : > { %882 = vmatpush3.bf16.msra.mxu0 %v986_v3  ;;  %889 = vmatprep.subr.bf16.mxu1 %v1109_v2  ;;  %v857_v50 = vld [vmem:[%s409_s28] ss:$0 sm:$0xff] }
  0x4d   : > { %v640_v53 = vld [vmem:[#allocation2] sm:$0xff] }
  0x4f   : > { %884 = vmatmul.mubr.msk.bf16.vlgmr.msra.gmra.mxu0 %vm456_vm2, %v432_v6  ;;  %890 = vmatpush3.bf16.msra.mxu1 %v988_v8 }
  0x50   : > { %891 = vmatprep.subr.bf16.mxu1 %v1109_v2 }
  0x53   : > { %892 = vmatpush3.bf16.msra.mxu1 %v989_v9 }
  0x54   : > { %893 = vmatprep.subr.bf16.mxu1 %v1109_v2 }
  0x57   : > { %894 = vmatpush3.bf16.msra.mxu1 %v990_v10 }
  0x58   : > { %895 = vmatprep.subr.bf16.mxu1 %v1109_v2 }
  0x5b   : > { %896 = vmatpush3.bf16.msra.mxu1 %v991_v11 }
  0x5c   : > { %897 = vmatprep.subr.bf16.mxu1 %v1109_v2 }
  0x5f   : > { %898 = vmatpush3.bf16.msra.mxu1 %v992_v12 }
  0x60   : > { %899 = vmatprep.subr.bf16.mxu1 %v1109_v2 }
  0x63   : > { %900 = vmatpush3.bf16.msra.mxu1 %v993_v13 }
  0x64   : > { %901 = vmatprep.subr.bf16.mxu1 %v1109_v2 }
  0x67   : > { %902 = vmatpush3.bf16.msra.mxu1 %v994_v14 }
  0xc5   : > { %v529_v46 = vpop.permute.xlu0 %528 }
  0xc6   : > { %v648_v51 = vmul.f32 %v857_v50, %v529_v46 }
 0x10f   : > { %v494_v16 = vpop.f32.mrf.mxu0 }
 0x110   : > { %v495_v17 = vadd.f32 %v845_v15, %v494_v16 }
 0x111   : > { %v885_v18 = vpop.f32.mrf.mxu0 }
 0x112   : > { %v501_v19 = vmul.f32 0.70710677, %v495_v17  ;;  %v500_v44 = vmul.f32 0.5, %v495_v17 }
 0x113   : > { %v497_v20 = vpop.f32.mrf.mxu0 }
 0x114   : > { %v504_v21 = vand.u32 2147483647, %v501_v19  ;;  %vm502_vm3 = vcmp.lt.f32.partialorder %v501_v19, 0.0 }
 0x115   : > { %v886_v22 = vpop.f32.mrf.mxu0  ;;  %v503_v42 = vsel %vm502_vm3, -1.0, %v1112_v41 }
 0x116   : > { %v505_v23 = vmul.f32 0.3275911, %v504_v21  ;;  %v517_v25 = vsub.f32 0.0, %v504_v21 }
 0x118   : > { %v506_v24 = vadd.f32 1.0, %v505_v23  ;;  %v518_v26 = vmul.f32 %v517_v25, %v504_v21 }
 0x11a   : > { %995 = vrcp.f32 %v506_v24  ;;  %v519_v28 = vmul.f32 1.442695, %v518_v26 }
 0x11c   : > { %997 = vpow2.f32 %v519_v28 }
 0x127   : > { %v996_v27 = vpop.eup %995 }
 0x128   : > { %v508_v29 = vmul.f32 1.0614054, %v996_v27 }
 0x129   : > { %v998_v38 = vpop.eup %997 }
 0x12a   : > { %v509_v30 = vadd.f32 -1.4531521, %v508_v29 }
 0x12c   : > { %v510_v31 = vmul.f32 %v996_v27, %v509_v30 }
 0x12e   : > { %v511_v32 = vadd.f32 1.4214138, %v510_v31 }
 0x130   : > { %v512_v33 = vmul.f32 %v996_v27, %v511_v32 }
 0x132   : > { %v513_v34 = vadd.f32 -0.28449672, %v512_v33 }
 0x134   : > { %v514_v35 = vmul.f32 %v996_v27, %v513_v34 }
 0x136   : > { %v515_v36 = vadd.f32 0.2548296, %v514_v35 }
 0x138   : > { %v516_v37 = vmul.f32 %v996_v27, %v515_v36 }
 0x13a   : > { %v521_v39 = vmul.f32 %v998_v38, %v516_v37 }
 0x13c   : > { %v522_v40 = vsub.f32 1.0, %v521_v39 }
 0x13e   : > { %v523_v43 = vmul.f32 %v522_v40, %v503_v42 }
 0x140   : > { %v524_v45 = vadd.f32 1.0, %v523_v43 }
 0x142   : > { %v525_v47 = vmul.f32 %v524_v45, %v500_v44 }
 0x144   : > { %v531_v48 = vmul.f32 %v529_v46, %v525_v47 }
 0x146   : > { %v532_v49 = vpack.c.bf16 %v531_v48, %v531_v48 }
 0x148   : > { %904 = vmatmul.mubr.bf16.vlgmr.msra.gmra.mxu1 %v532_v49 }
 0x208   : > { %v631_v52 = vpop.f32.mrf.mxu1 }
 0x209   : > { %v649_v54 = vadd.f32 %v648_v51, %v631_v52 }
 0x20a   : > { %v905_v55 = vpop.f32.mrf.mxu1 }
 0x20b   : > { %v650_v56 = vadd.f32 %v649_v54, %v640_v53 }
 0x20c   : > { %v634_v57 = vpop.f32.mrf.mxu1 }
 0x20d   : > { %651 = vst.msk [vmem:[#allocation2] sm:$0xff] %vm456_vm2, %v650_v56 }
 0x20e   : > { %v906_v58 = vpop.f32.mrf.mxu1 }
 0x20f PF: > { %p659_p7 = scmp.eq.s32.totalorder %s1089_s8, 3 }
 0x210   : > { %vm665_vm4 = vcmask (%p659_p7), 261120  }
 0x211   : > { %663 = sbr.rel (!%p659_p7) target bundleno = 534 (0x216), region = 64 }
 0x214   : > { %v664_v59 = vld [vmem:[#allocation2] sm:$0xff] (%p659_p7) }
 0x215   : > { %666 = vst.msk [vmem:[%s370_s15] sm:$0xff] (%p659_p7), %vm665_vm4, %v664_v59 }
 0x216 PF: > { %s860_s25 = sshll.u32 %s1093_s9, 7  ;;  %s1373_s27 = sld [smem:[#allocation18_spill]] }
 0x217   : > { %s681_s28 = sshll.u32 %s370_s15, 4  ;;  %s1374_s8 = sand.u32 1, %s1081_s30   ;;  %s682_s28 = int_to_ptr.vmem [resolvable:$true] %s681_s28 }
 0x218   : > { %s668_s24 = scalar_lea.sflag [#allocation6], %s1374_s8  ;;  %s1011_s14 = scalar_lea.vmem %s682_s28, 128 }
 0x219   : > { %p1012_p9 = scmp.ne.s32.totalorder %s682_s28, %s1011_s14  ;;  %s1113_s19 = smov [#allocation5]  }
 0x21a   : > { %s1015_s29 = sshll.u32 %s1113_s19, 4  ;;  %s1016_s29 = int_to_ptr.vmem [resolvable:$false] %s1015_s29 }
 0x21b   : > { %p1013_p10 = pnand %p1012_p9, %p1206_p8  ;;  %s1017_s10 = scalar_lea.vmem %s1016_s29, 256 }
 0x21c   : > { %s679_s26 = scalar_lea.hbm %s1373_s27, %s860_s25  ;;  %p1018_p12 = scmp.lt.s32.totalorder %s682_s28, %s1016_s29 }
 0x21d   : > { %p1014_p11 = pneg %p1013_p10  ;;  %p1019_p13 = scmp.lt.s32.totalorder %s1017_s10, %s1011_s14 }
 0x21f   : > { %p1020_p1 = por %p1019_p13, %p1018_p12 }
 0x221   : > { %p1021_p2 = pnand %p1020_p1, %p1014_p11 }
 0x223   : > { %1024 = shalt.err (!%p1021_p2)
}
 0x224   : > { %s1025_s9 = scalar_lea.hbm %s679_s26, 128  ;;  %s1029_s16 = scalar_lea.hbm %s1373_s27, 256 }
 0x225   : > { %p1026_p3 = scmp.ne.s32.totalorder %s679_s26, %s1025_s9  ;;  %p1030_p6 = scmp.lt.s32.totalorder %s679_s26, %s1373_s27 }
 0x226   : > { %p1031_p7 = scmp.lt.s32.totalorder %s1029_s16, %s1025_s9 }
 0x227   : > { %p1027_p4 = pnand %p1026_p3, %p1206_p8 }
 0x228   : > { %p1032_p9 = por %p1031_p7, %p1030_p6 }
 0x229   : > { %p1028_p5 = pneg %p1027_p4 }
 0x22b   : > { %p1033_p10 = pnand %p1032_p9, %p1028_p5 }
 0x22d   : > { %1036 = shalt.err (!%p1033_p10)
}
 0x22e   : > { %907 = dma.vmem_to_hbm [thread:$0]  (%p1206_p8), %s682_s28, 128, %s679_s26, %s668_s24  }
 0x22f PF: > { %s1375_s22 = sld [smem:[#allocation13_spill]] }
 0x230   : > { %s1376_s7 = sld [smem:[#allocation9_spill]] }
 0x235   : > { %p913_p11 = scmp.ge.s32.totalorder %s1375_s22, 2 }
 0x236   : > { %s693_s11 = sand.u32 1, %s1376_s7  }
 0x237   : > { %p910_p12 = pnand %p913_p11, %p1216_p0  ;;  %s694_s12 = scalar_lea.sflag [#allocation6], %s693_s11 }
 0x239   : > { %p911_p13 = pneg %p910_p12 }
 0x23b   : > { %1072 = dma.done.wait (%p911_p13), %s694_s12, 128  }
 0x23c   : > { %1074 = vsyncadd (%p911_p13), %s694_s12, 4294967168  ;;  %s26_s12 = sadd.s32 1, %s1375_s22   ;;  %s1378_s25 = sld [smem:[#allocation10_spill]] }
 0x23d   : > { %p23_p1 = scmp.ge.s32.totalorder %s26_s12, 10   ;;  %s1379_s0 = sld [smem:[#allocation17_spill]] }
 0x23e   : > { %s1380_s8 = sld [smem:[#allocation11_spill]]  ;;  %s1384_s29 = smov %s1081_s30 }
 0x23f   : > { %s1381_s9 = sld [smem:[#allocation12_spill]]  ;;  %25 = sbr.rel (!%p23_p1) target bundleno = 20 (0x14), region = 114 }
 0x240   : > { %s1382_s10 = sld [smem:[#allocation14_spill]] }
 0x241   : > { %s1383_s11 = sld [smem:[#allocation15_spill]] }
 0x242   : > { %s1385_s30 = smov %s1378_s25 }
 0x244   :  { %699 = vsyncpa [#allocation6], 1 }
 0x245   :  { %701 = vsyncpa [#allocation6 + $0x1], 1 }

</bundles_post_ra>
